<compile_context>
chip_gen: v7x
topology: tpu7x:2x2x1
jax: 0.10.0
libtpu: 0.0.40
codegen_flags: <defaults>
</compile_context>

<pallas_src>
import jax
import jax.numpy as jnp
from jax.experimental import pallas as pl
from jax.experimental.pallas import tpu as pltpu


def gcn_kernel(a_ref, dinv_ref, doc_ref, w1t_ref, b1_ref, wct_ref, bc_ref, out_ref):
    # a_ref   : (Tn, Np)  bf16 row tile of (padded) A               -- streamed
    # dinv_ref: (Tn, 1)   f32  per-row 1/(colsum(A)+1)              -- streamed
    # doc_ref : (Np, E)   bf16 raw document embeddings              -- resident
    # w1t_ref : (E, E)    bf16 Linear(E,E) weight, transposed       -- resident
    # b1_ref  : (1, E)    f32
    # wct_ref : (E, Cp)   bf16 classifier weight, transposed+padded -- resident
    # bc_ref  : (1, Cp)   f32
    tn = a_ref.shape[0]
    row0 = pl.multiple_of(pl.program_id(0) * tn, tn)

    a = a_ref[...]                                                     # (Tn, Np)

    # (A + I) @ doc == A @ doc + doc[row tile]    (identity folded, never streamed)
    agg = (jnp.dot(a, doc_ref[...], preferred_element_type=jnp.float32)
           + doc_ref[pl.ds(row0, tn), :].astype(jnp.float32))          # (Tn, E)

    # rowsum(A + I) == rowsum(A) + 1   (carries b1 through the linear fold)
    rowsum = jnp.sum(a.astype(jnp.float32), axis=1, keepdims=True) + 1.0  # (Tn, 1)

    # ((A+I) @ doc) @ W1^T + rowsum(A+I) * b1  ==  (A+I) @ (doc @ W1^T + b1)
    h = (jnp.dot(agg.astype(w1t_ref.dtype), w1t_ref[...],
                 preferred_element_type=jnp.float32)
         + rowsum * b1_ref[...])                                        # (Tn, E)
    h = jnp.maximum(h, 0.0)

    # D = diag(dinv) with dinv = 1/(deg+1) > 0 for a non-negative adjacency, so
    # the row scale commutes with relu and the classifier matmul: apply on (Tn, Cp).
    out = (dinv_ref[...]
           * jnp.dot(h.astype(wct_ref.dtype), wct_ref[...],
                     preferred_element_type=jnp.float32)
           + bc_ref[...])                                               # (Tn, Cp)
    out_ref[...] = out.astype(out_ref.dtype)


def _round_up(x, m):
    return -(-x // m) * m


def _pick_block_n(n, target=256, align=16):
    """Row-tile size: multiple of 16 (bf16 sublanes), ~`target` rows, and
    >= 2 grid steps whenever possible so both v7x TensorCores get work."""
    n_al = _round_up(n, align)
    if n_al <= align:
        return align
    steps = max(2, -(-n_al // target))
    b = _round_up(-(-n_al // steps), align)
    return max(align, min(b, n_al))


def sentence_gcn_forward(A, I, doc, params, block_n=None, dinv=None):
    """A, I: (1, N, N) float32, doc: (1, N, E) float32 -> (1, N, num_tags) float32.

    `I` is accepted for API parity with the PyTorch module but is assumed to be
    the identity and folded algebraically (never streamed from HBM).
    `dinv` may be supplied by the caller (static-graph case) to skip the
    wrapper-side column-sum pass over A.
    """
    B, N, E = doc.shape
    assert B == 1, "torch.bmm with a (1,N,N) D requires batch size 1"
    C = params['wc_t'].shape[1]

    A0 = A[0].astype(jnp.float32)
    doc0 = doc[0]

    # Degree normalization uses *column* sums of A (torch A.sum(1)). This is the
    # only extra pass over A; cache/hoist `dinv` if A is static across calls.
    if dinv is None:
        dinv = 1.0 / (jnp.sum(A0, axis=0) + 1.0)
    dinv = jnp.asarray(dinv, jnp.float32).reshape(N, 1)

    if block_n is None:
        block_n = _pick_block_n(N)
    N_pad = _round_up(N, block_n)
    C_pad = max(128, _round_up(C, 128))
    grid = (N_pad // block_n,)

    # --- pad + cast (A is 0/1 -> exact in bf16; padded rows/cols are zero) ---
    a_p = jnp.pad(A0.astype(jnp.bfloat16), ((0, N_pad - N), (0, N_pad - N)))
    doc_p = jnp.pad(doc0.astype(jnp.bfloat16), ((0, N_pad - N), (0, 0)))
    dinv_p = jnp.pad(dinv, ((0, N_pad - N), (0, 0)), constant_values=1.0)
    w1t = params['w1_t'].astype(jnp.bfloat16)
    b1 = params['b1'].astype(jnp.float32).reshape(1, E)
    wct_p = jnp.pad(params['wc_t'].astype(jnp.bfloat16), ((0, 0), (0, C_pad - C)))
    bc_p = jnp.pad(params['bc'].astype(jnp.float32).reshape(1, C),
                   ((0, 0), (0, C_pad - C)))

    # VMEM footprint estimate (double-buffered streamed tiles + residents).
    est_vmem = (2 * block_n * N_pad * 2      # A tiles (bf16)
                + N_pad * E * 2              # doc resident (bf16)
                + E * E * 2 + E * C_pad * 2  # weights (bf16)
                + 2 * block_n * C_pad * 4    # out tiles (f32)
                + 2 * block_n * 4 + E * 4 + C_pad * 4)
    vmem_limit = int(min(max(est_vmem * 3 // 2 + (4 << 20), 32 << 20), 64 << 20))

    out = pl.pallas_call(
        gcn_kernel,
        out_shape=jax.ShapeDtypeStruct((N_pad, C_pad), jnp.float32),
        grid=grid,
        in_specs=[
            pl.BlockSpec((block_n, N_pad), lambda i: (i, 0)),   # A row tile (streams)
            pl.BlockSpec((block_n, 1), lambda i: (i, 0)),       # dinv tile
            pl.BlockSpec((N_pad, E), lambda i: (0, 0)),         # doc (resident)
            pl.BlockSpec((E, E), lambda i: (0, 0)),             # W1^T (resident)
            pl.BlockSpec((1, E), lambda i: (0, 0)),             # b1
            pl.BlockSpec((E, C_pad), lambda i: (0, 0)),         # Wc^T padded (resident)
            pl.BlockSpec((1, C_pad), lambda i: (0, 0)),         # bc padded
        ],
        out_specs=pl.BlockSpec((block_n, C_pad), lambda i: (i, 0)),
        compiler_params=pltpu.CompilerParams(
            dimension_semantics=("parallel",),
            vmem_limit_bytes=vmem_limit),
    )(a_p, dinv_p, doc_p, w1t, b1, wct_p, bc_p)

    return out[:N, :C][None]                                    # (1, N, C)


# ---------------- pure-JAX reference (mirrors the PyTorch forward) ----------------
def gcn_reference(A, I, doc, params):
    x = doc @ params['w1_t'] + params['b1']                     # linear
    deg = A.sum(axis=1) + 1.0                                   # (B, N) column sums
    D = jnp.diag(1.0 / deg[0])[None]                            # (1, N, N)
    x = D @ ((A + I) @ x)
    x = jax.nn.relu(x) @ params['wc_t'] + params['bc']          # linear_class
    return x


def init_params(key, emb, num_tags):
    k1, k2, k3, k4 = jax.random.split(key, 4)
    s = 0.1
    return {
        'w1_t': jax.random.normal(k1, (emb, emb), jnp.float32) * s,      # Linear(E,E) W^T
        'b1':   jax.random.normal(k2, (1, emb), jnp.float32) * s,
        'wc_t': jax.random.normal(k3, (emb, num_tags), jnp.float32) * s,  # Linear(E,C) W^T
        'bc':   jax.random.normal(k4, (1, num_tags), jnp.float32) * s,
    }


if __name__ == "__main__":
    # Small shapes consistent with the module; N=48 exercises row padding
    # (48 -> 64, block_n=32, grid of 2) and C=20 exercises the lane padding to 128.
    B, N, E, C = 1, 48, 128, 20

    key = jax.random.PRNGKey(0)
    k_a, k_doc, k_par = jax.random.split(key, 3)

    A = (jax.random.uniform(k_a, (B, N, N)) > 0.5).astype(jnp.float32)   # 0/1 adjacency
    I = jnp.broadcast_to(jnp.eye(N, dtype=jnp.float32), (B, N, N))       # identity
    doc = jax.random.normal(k_doc, (B, N, E), jnp.float32)
    params = init_params(k_par, E, C)

    out = jax.block_until_ready(sentence_gcn_forward(A, I, doc, params))
    ref = gcn_reference(A, I, doc, params)

    assert out.shape == (B, N, C)
    err = float(jnp.max(jnp.abs(out - ref)))
    scale = float(jnp.max(jnp.abs(ref))) + 1.0
    # bf16 inputs/weights -> looser tolerance than the pure-f32 version.
    assert err <= 3e-2 * scale, f"max abs err {err} (scale {scale})"

    print("KERNEL_OK")
</pallas_src>

<mosaic_0001>
module attributes {stable_mosaic.version = 11 : i64} {
  func.func @gcn_kernel(%arg0: i32, %arg1: memref<32x64xbf16, #tpu.memory_space<vmem>>, %arg2: memref<32x1xf32, #tpu.memory_space<vmem>>, %arg3: memref<64x128xbf16, #tpu.memory_space<vmem>>, %arg4: memref<128x128xbf16, #tpu.memory_space<vmem>>, %arg5: memref<1x128xf32, #tpu.memory_space<vmem>>, %arg6: memref<128x128xbf16, #tpu.memory_space<vmem>>, %arg7: memref<1x128xf32, #tpu.memory_space<vmem>>, %arg8: memref<32x128xf32, #tpu.memory_space<vmem>>) attributes {dimension_semantics = [#tpu.dimension_semantics<parallel>], iteration_bounds = array<i64: 2>, scalar_prefetch = 0 : i64, scratch_operands = 0 : i64, tpu.core_type = #tpu.core_type<tc>, window_params = [{transform_indices = @transform_0, window_bounds = array<i64: 32, 64>}, {transform_indices = @transform_1, window_bounds = array<i64: 32, 1>}, {pipeline_mode = #tpu.pipeline_mode<synchronous>, transform_indices = @transform_2, window_bounds = array<i64: 64, 128>}, {pipeline_mode = #tpu.pipeline_mode<synchronous>, transform_indices = @transform_3, window_bounds = array<i64: 128, 128>}, {pipeline_mode = #tpu.pipeline_mode<synchronous>, transform_indices = @transform_4, window_bounds = array<i64: 1, 128>}, {pipeline_mode = #tpu.pipeline_mode<synchronous>, transform_indices = @transform_5, window_bounds = array<i64: 128, 128>}, {pipeline_mode = #tpu.pipeline_mode<synchronous>, transform_indices = @transform_6, window_bounds = array<i64: 1, 128>}, {transform_indices = @transform_7, window_bounds = array<i64: 32, 128>}]} {
    %c32_i32 = arith.constant 32 : i32
    %0 = arith.muli %arg0, %c32_i32 : i32
    %1 = tpu.assume_multiple %0, 32 : i32
    %c0 = arith.constant 0 : index
    %c0_0 = arith.constant 0 : index
    %2 = vector.load %arg1[%c0, %c0_0] : memref<32x64xbf16, #tpu.memory_space<vmem>>, vector<32x64xbf16>
    %c0_1 = arith.constant 0 : index
    %c0_2 = arith.constant 0 : index
    %3 = vector.load %arg3[%c0_1, %c0_2] : memref<64x128xbf16, #tpu.memory_space<vmem>>, vector<64x128xbf16>
    %cst = arith.constant dense<0.000000e+00> : vector<32x128xf32>
    %4 = tpu.matmul %2, %3, %cst {dimension_numbers = #tpu.dot_dimension_numbers<[1], [0], [0], [1], [0, 0, 1, 1], [], []>} : vector<32x64xbf16>, vector<64x128xbf16>, vector<32x128xf32> -> vector<32x128xf32>
    %5 = arith.index_cast %1 : i32 to index
    %c0_3 = arith.constant 0 : index
    %6 = vector.load %arg3[%5, %c0_3] : memref<64x128xbf16, #tpu.memory_space<vmem>>, vector<32x128xbf16>
    %7 = arith.extf %6 : vector<32x128xbf16> to vector<32x128xf32>
    %8 = arith.addf %4, %7 : vector<32x128xf32>
    %9 = arith.extf %2 : vector<32x64xbf16> to vector<32x64xf32>
    %cst_4 = arith.constant dense<0.000000e+00> : vector<32xf32>
    %10 = vector.multi_reduction <add>, %9, %cst_4 [1] : vector<32x64xf32> to vector<32xf32>
    %11 = vector.shape_cast %10 : vector<32xf32> to vector<32x1xf32>
    %cst_5 = arith.constant 1.000000e+00 : f32
    %12 = vector.broadcast %cst_5 : f32 to vector<32x1xf32>
    %13 = arith.addf %11, %12 : vector<32x1xf32>
    %14 = arith.truncf %8 : vector<32x128xf32> to vector<32x128xbf16>
    %c0_6 = arith.constant 0 : index
    %c0_7 = arith.constant 0 : index
    %15 = vector.load %arg4[%c0_6, %c0_7] : memref<128x128xbf16, #tpu.memory_space<vmem>>, vector<128x128xbf16>
    %cst_8 = arith.constant dense<0.000000e+00> : vector<32x128xf32>
    %16 = tpu.matmul %14, %15, %cst_8 {dimension_numbers = #tpu.dot_dimension_numbers<[1], [0], [0], [1], [0, 0, 1, 1], [], []>} : vector<32x128xbf16>, vector<128x128xbf16>, vector<32x128xf32> -> vector<32x128xf32>
    %c0_9 = arith.constant 0 : index
    %c0_10 = arith.constant 0 : index
    %17 = vector.load %arg5[%c0_9, %c0_10] : memref<1x128xf32, #tpu.memory_space<vmem>>, vector<1x128xf32>
    %18 = vector.broadcast %13 : vector<32x1xf32> to vector<32x128xf32>
    %19 = vector.broadcast %17 : vector<1x128xf32> to vector<32x128xf32>
    %20 = arith.mulf %18, %19 : vector<32x128xf32>
    %21 = arith.addf %16, %20 : vector<32x128xf32>
    %cst_11 = arith.constant 0.000000e+00 : f32
    %22 = vector.broadcast %cst_11 : f32 to vector<32x128xf32>
    %23 = arith.maximumf %21, %22 : vector<32x128xf32>
    %c0_12 = arith.constant 0 : index
    %c0_13 = arith.constant 0 : index
    %24 = vector.load %arg2[%c0_12, %c0_13] : memref<32x1xf32, #tpu.memory_space<vmem>>, vector<32x1xf32>
    %25 = arith.truncf %23 : vector<32x128xf32> to vector<32x128xbf16>
    %c0_14 = arith.constant 0 : index
    %c0_15 = arith.constant 0 : index
    %26 = vector.load %arg6[%c0_14, %c0_15] : memref<128x128xbf16, #tpu.memory_space<vmem>>, vector<128x128xbf16>
    %cst_16 = arith.constant dense<0.000000e+00> : vector<32x128xf32>
    %27 = tpu.matmul %25, %26, %cst_16 {dimension_numbers = #tpu.dot_dimension_numbers<[1], [0], [0], [1], [0, 0, 1, 1], [], []>} : vector<32x128xbf16>, vector<128x128xbf16>, vector<32x128xf32> -> vector<32x128xf32>
    %28 = vector.broadcast %24 : vector<32x1xf32> to vector<32x128xf32>
    %29 = arith.mulf %28, %27 : vector<32x128xf32>
    %c0_17 = arith.constant 0 : index
    %c0_18 = arith.constant 0 : index
    %30 = vector.load %arg7[%c0_17, %c0_18] : memref<1x128xf32, #tpu.memory_space<vmem>>, vector<1x128xf32>
    %31 = vector.broadcast %30 : vector<1x128xf32> to vector<32x128xf32>
    %32 = arith.addf %29, %31 : vector<32x128xf32>
    %c0_19 = arith.constant 0 : index
    %c0_20 = arith.constant 0 : index
    %33 = vector.load %arg8[%c0_19, %c0_20] : memref<32x128xf32, #tpu.memory_space<vmem>>, vector<32x128xf32>
    tpu.vector_store %arg8[%c0_19, %c0_20], %32 {strides = array<i32>} : memref<32x128xf32, #tpu.memory_space<vmem>>, vector<32x128xf32>,
    return
  }
  func.func @transform_0(%arg0: i32) -> (i32, i32) {
    %c0_i32 = arith.constant 0 : i32
    %c0_i32_0 = arith.constant 0 : i32
    return %arg0, %c0_i32 : i32, i32
  }
  func.func @transform_1(%arg0: i32) -> (i32, i32) {
    %c0_i32 = arith.constant 0 : i32
    %c0_i32_0 = arith.constant 0 : i32
    return %arg0, %c0_i32 : i32, i32
  }
  func.func @transform_2(%arg0: i32) -> (i32, i32) {
    %c0_i32 = arith.constant 0 : i32
    %c0_i32_0 = arith.constant 0 : i32
    %c0_i32_1 = arith.constant 0 : i32
    return %c0_i32, %c0_i32_0 : i32, i32
  }
  func.func @transform_3(%arg0: i32) -> (i32, i32) {
    %c0_i32 = arith.constant 0 : i32
    %c0_i32_0 = arith.constant 0 : i32
    %c0_i32_1 = arith.constant 0 : i32
    return %c0_i32, %c0_i32_0 : i32, i32
  }
  func.func @transform_4(%arg0: i32) -> (i32, i32) {
    %c0_i32 = arith.constant 0 : i32
    %c0_i32_0 = arith.constant 0 : i32
    %c0_i32_1 = arith.constant 0 : i32
    return %c0_i32, %c0_i32_0 : i32, i32
  }
  func.func @transform_5(%arg0: i32) -> (i32, i32) {
    %c0_i32 = arith.constant 0 : i32
    %c0_i32_0 = arith.constant 0 : i32
    %c0_i32_1 = arith.constant 0 : i32
    return %c0_i32, %c0_i32_0 : i32, i32
  }
  func.func @transform_6(%arg0: i32) -> (i32, i32) {
    %c0_i32 = arith.constant 0 : i32
    %c0_i32_0 = arith.constant 0 : i32
    %c0_i32_1 = arith.constant 0 : i32
    return %c0_i32, %c0_i32_0 : i32, i32
  }
  func.func @transform_7(%arg0: i32) -> (i32, i32) {
    %c0_i32 = arith.constant 0 : i32
    %c0_i32_0 = arith.constant 0 : i32
    return %arg0, %c0_i32 : i32, i32
  }
}

</mosaic_0001>

<bundles_post_ra>
// kernel: tpu_custom_call.1
= control target key start
LH: loop header
LB: loop body
LE: loop exit
PB: predicated region body
PF: predicated region fallthrough
CT: control target
= control target key end

     0   :  { %12 = vsyncpa [#allocation3], 0  ;;  %s1621_s0 = inlined_call_operand.hbm [shape: bf16[64,64], index: 0, kind: input, shape index: {}]   ;;  %s1622_s1 = inlined_call_operand.vmem [shape: f32[64,1], index: 1, kind: input, shape index: {}]   ;;  %s1623_s2 = inlined_call_operand.hbm [shape: bf16[64,128], index: 2, kind: input, shape index: {}]   ;;  %s1624_s3 = inlined_call_operand.vmem [shape: bf16[128,128], index: 3, kind: input, shape index: {}]   ;;  %s1625_s4 = inlined_call_operand.vmem [shape: f32[1,128], index: 4, kind: input, shape index: {}]   ;;  %s1626_s5 = inlined_call_operand.hbm [shape: bf16[128,128], index: 5, kind: input, shape index: {}]   ;;  %s1627_s6 = inlined_call_operand.vmem [shape: f32[1,128], index: 6, kind: input, shape index: {}]   ;;  %s1628_s7 = inlined_call_operand.hbm [shape: f32[64,128], index: 7, kind: output, shape index: {}]  }
   0x1   :  { %14 = vsyncpa [#allocation3 + $0x1], 0 }
   0x2   :  { %15 = vsyncpa [#allocation6], 0 }
   0x3   :  { %16 = vsyncpa [#allocation4], 0 }
   0x4   :  { %18 = vsyncpa [#allocation4 + $0x1], 0  ;;  %s1336_s24 = smov 0   ;;  %s1338_s25 = smov 0  }
   0x5   :  { %s1340_s26 = smov 0   ;;  %s1342_s27 = smov 0  }
   0x6 LB: > { %s1357_s28 = sadd.s32 4294967295, %s1285_s27   ;;  %s894_s29 = sadd.s32 4294967294, %s1285_s27   ;;  %s1285_s27 = sphi %s1342_s27, %s1650_s27   ;;  %s1281_s26 = sphi %s1340_s26, %s1649_s26   ;;  %s1277_s25 = sphi %s1338_s25, %s1648_s25   ;;  %s1273_s24 = sphi %s1336_s24, %s1647_s24  }
   0x7   : > { %p44_p0 = scmp.ne.s32.totalorder %s1277_s25, %s1273_s24  ;;  %p1629_p1 = scmp.eq.s32.totalorder %s1357_s28, 0 }
   0x8   : > { %p205_p3 = scmp.eq.s32.totalorder %s894_s29, 1  ;;  %p895_p5 = scmp.ge.s32.totalorder %s1285_s27, 1 }
   0x9   : > { %p1366_p4 = por %p1629_p1, %p44_p0  ;;  %p212_p7 = scmp.lt.s32.totalorder %s1285_s27, 3 }
   0xa   : > { %p1371_p6 = por %p205_p3, %p44_p0  ;;  %s1287_s10 = smov [#allocation5]  }
   0xb   : > { %s1633_s30 = scalar_select %p1366_p4, 1, 0 }
   0xc   : > { %s1634_s8 = scalar_select %p1371_p6, 1, 0 }
   0xd   : > { %p1376_p8 = pnand %p895_p5, %p212_p7  ;;  %s224_s11 = sshll.u32 %s1287_s10, 4  ;;  %s1380_s11 = int_to_ptr.vmem [resolvable:$true] %s224_s11 }
   0xe   : > { %s1288_s13 = smov [#allocation7]   ;;  %s1129_s17 = scalar_lea.hbm %s1623_s2, 512 }
   0xf   : > { %p1043_p9 = pneg %p1376_p8  ;;  %s243_s14 = sshll.u32 %s1288_s13, 4  ;;  %s1391_s14 = int_to_ptr.vmem [resolvable:$true] %s243_s14 }
  0x10   : > { %p1130_p12 = scmp.ne.s32.totalorder %s1623_s2, %s1129_s17  ;;  %p1136_p5 = scmp.lt.u32.totalorder %s1129_s17, %s1623_s2 }
  0x11   : > { %p1387_p11 = pnand %p1043_p9, %p1629_p1 }
  0x13   : > { %p1131_p13 = pneg %p1387_p11 }
  0x15   : > { %p1132_p0 = pnand %p1131_p13, %p1130_p12 }
  0x17   : > { %p1133_p3 = pneg %p1132_p0 }
  0x19   : > { %p1138_p7 = pnand %p1136_p5, %p1133_p3 }
  0x1b   : > { %1141 = shalt.err (!%p1138_p7)
}
  0x1c   : > { %s1142_s22 = scalar_lea.vmem %s1380_s11, 512  ;;  %p1150_p2 = scmp.lt.s32.totalorder %s1380_s11, %s1380_s11 }
  0x1d   : > { %p1143_p9 = scmp.ne.s32.totalorder %s1380_s11, %s1142_s22  ;;  %p1151_p12 = scmp.lt.s32.totalorder %s1142_s22, %s1142_s22 }
  0x1f   : > { %p1145_p10 = pnand %p1143_p9, %p1131_p13  ;;  %p1152_p0 = por %p1151_p12, %p1150_p2 }
  0x21   : > { %p1146_p1 = pneg %p1145_p10 }
  0x23   : > { %p1153_p6 = pnand %p1152_p0, %p1146_p1 }
  0x25   : > { %1156 = shalt.err (!%p1153_p6)
}
  0x26   : > { %s1630_s23 = smov 64   ;;  %s1290_s29 = smov 4  }
  0x27   : > { %1046 = dma.hbm_to_vmem [thread:$0]  (!%p1387_p11), %s1623_s2, 512, %s1380_s11, [#allocation6], %s1630_s23, %s1630_s23, %s1290_s29  }
  0x28   : > { %s1157_s17 = scalar_lea.hbm %s1626_s5, 1024 }
  0x29   : > { %p1158_p1 = scmp.ne.s32.totalorder %s1626_s5, %s1157_s17  ;;  %p1164_p10 = scmp.lt.u32.totalorder %s1157_s17, %s1626_s5 }
  0x2b   : > { %p1160_p2 = pnand %p1158_p1, %p1131_p13 }
  0x2d   : > { %p1161_p6 = pneg %p1160_p2 }
  0x2f   : > { %p1166_p3 = pnand %p1164_p10, %p1161_p6 }
  0x31   : > { %1169 = shalt.err (!%p1166_p3)
}
  0x32   : > { %s1170_s11 = scalar_lea.vmem %s1391_s14, 1024  ;;  %p1178_p12 = scmp.lt.s32.totalorder %s1391_s14, %s1391_s14 }
  0x33   : > { %p1171_p5 = scmp.ne.s32.totalorder %s1391_s14, %s1170_s11  ;;  %p1179_p0 = scmp.lt.s32.totalorder %s1170_s11, %s1170_s11 }
  0x35   : > { %p1173_p7 = pnand %p1171_p5, %p1131_p13  ;;  %p1180_p1 = por %p1179_p0, %p1178_p12 }
  0x37   : > { %p1174_p9 = pneg %p1173_p7 }
  0x39   : > { %p1181_p2 = pnand %p1180_p1, %p1174_p9 }
  0x3b   : > { %1184 = shalt.err (!%p1181_p2)
}
  0x3c   : > { %1049 = dma.hbm_to_vmem [thread:$0]  (!%p1387_p11), %s1626_s5, 1024, %s1391_s14, [#allocation6], %s1630_s23, %s1630_s23, %s1290_s29  }
  0x3d   : > { %s1452_s12 = sadd.s32 1, %s1285_s27   ;;  %s31_s13 = sadd.s32 1, %s1281_s26 }
  0x3e   : > { %s28_s15 = ssub.s32 %s1285_s27, %s1452_s12  ;;  %p38_p13 = scmp.ne.s32.totalorder %s1281_s26, %s1277_s25 }
  0x3f   : > { %p29_p6 = scmp.eq.s32.totalorder %s28_s15, 0  ;;  %p39_p10 = scmp.eq.s32.totalorder %s1285_s27, 0 }
  0x40   : > { %p1637_p3 = scmp.eq.s32.totalorder %s1357_s28, 1  ;;  %p1060_p7 = scmp.lt.s32.totalorder %s1285_s27, 2 }
  0x41   : > { %s1468_s17 = scalar_select %p29_p6, %s1281_s26, %s31_s13  }
  0x42   : > { %p1462_p5 = por %p1637_p3, %p38_p13  ;;  %p40_p9 = por %p39_p10, %p38_p13 }
  0x43   : > { %s260_s18 = sand.u32 1, %s1281_s26   ;;  %s942_s14 = sshll.u32 %s1285_s27, 8 }
  0x44   : > { %s1638_s16 = scalar_select %p1462_p5, 1, 0 }
  0x45   : > { %s899_s19 = sshll.u32 %s260_s18, 4  ;;  %s1475_s11 = scalar_lea.hbm %s1621_s0, %s942_s14 }
  0x46   : > { %s264_s22 = scalar_lea.vmem [#allocation2], %s899_s19  ;;  %p1479_p11 = pnand %p1060_p7, %p40_p9 }
  0x47   : > { %s271_s10 = sshll.u32 %s264_s22, 4  ;;  %s1483_s15 = scalar_lea.sflag [#allocation3], %s260_s18  ;;  %s1477_s10 = int_to_ptr.vmem [resolvable:$true] %s271_s10 }
  0x48   : > { %s1185_s23 = scalar_lea.hbm %s1475_s11, 256  ;;  %p1187_p0 = pneg %p1479_p11 }
  0x49   : > { %p1186_p12 = scmp.ne.s32.totalorder %s1475_s11, %s1185_s23  ;;  %s1190_s20 = scalar_lea.hbm %s1621_s0, 512 }
  0x4a   : > { %p1191_p13 = scmp.lt.u32.totalorder %s1475_s11, %s1621_s0  ;;  %p1192_p6 = scmp.lt.u32.totalorder %s1190_s20, %s1185_s23 }
  0x4b   : > { %p1188_p1 = pnand %p1187_p0, %p1186_p12  ;;  %p1194_p3 = scmp.lt.u32.totalorder %s1185_s23, %s1475_s11 }
  0x4c   : > { %p1193_p10 = por %p1192_p6, %p1191_p13 }
  0x4d   : > { %p1189_p2 = pneg %p1188_p1 }
  0x4e   : > { %p1195_p7 = por %p1194_p3, %p1193_p10 }
  0x50   : > { %p1196_p9 = pnand %p1195_p7, %p1189_p2 }
  0x52   : > { %1199 = shalt.err (!%p1196_p9)
}
  0x53   : > { %s1200_s18 = scalar_lea.vmem %s1477_s10, 256  ;;  %s1291_s19 = smov [#allocation2]  }
  0x54   : > { %p1201_p12 = scmp.ne.s32.totalorder %s1477_s10, %s1200_s18  ;;  %s1205_s14 = sshll.u32 %s1291_s19, 4  ;;  %s1206_s14 = int_to_ptr.vmem [resolvable:$false] %s1205_s14 }
  0x55   : > { %s1207_s21 = scalar_lea.vmem %s1206_s14, 512  ;;  %p1208_p4 = scmp.lt.s32.totalorder %s1477_s10, %s1206_s14 }
  0x56   : > { %p1203_p1 = pnand %p1201_p12, %p1187_p0  ;;  %p1209_p13 = scmp.lt.s32.totalorder %s1207_s21, %s1200_s18 }
  0x58   : > { %p1204_p5 = pneg %p1203_p1  ;;  %p1210_p6 = por %p1209_p13, %p1208_p4 }
  0x5a   : > { %p1211_p10 = pnand %p1210_p6, %p1204_p5 }
  0x5c   : > { %1214 = shalt.err (!%p1211_p10)
}
  0x5d   : > { %s1640_s23 = smov 64   ;;  %292 = sbr.rel (%p1376_p8) target bundleno = 797 (0x31d), region = 48 }
  0x5e   : > { %1053 = dma.hbm_to_vmem [thread:$0]  (!%p1479_p11), %s1475_s11, 256, %s1477_s10, %s1483_s15, %s1640_s23, %s1640_s23, %s1290_s29  }
  0x5f   : > { %s1517_s20 = sand.u32 (!%p1376_p8), 1, %s1277_s25   ;;  %p1641_p4 = scmp.ne.s32.totalorder (!%p1376_p8), %s1633_s30, 0 }
  0x60   : > { %s903_s22 = sshll.u32 (!%p1376_p8), %s1517_s20, 4  ;;  %s295_s18 = scalar_lea.sflag (!%p1376_p8), [#allocation3], %s1517_s20 }
  0x61   : > { %s298_s19 = scalar_lea.vmem (!%p1376_p8), [#allocation2], %s903_s22 }
  0x64   : > { %1260 = dma.done.wait (%p1641_p4), %s295_s18, 256  }
  0x65   : > { %1262 = vsyncadd (%p1641_p4), %s295_s18, 4294967040  ;;  %p1642_p5 = scmp.eq.s32.totalorder %s1357_s28, 0 }
  0x67   : > { %1264 = dma.done.wait (%p1642_p5), [#allocation6], 1536   ;;  %p1643_p11 = pmov %p1642_p5 }
  0x68   : > { %v1105_v0 = vld [vmem:[#allocation5] sm:$0xff]   ;;  %v1106_v1 = vld [vmem:[#allocation5 + $0x8] sm:$0xff]   ;;  %v1107_v2 = vld [vmem:[#allocation5 + $0x10] sm:$0xff]   ;;  %vm410_vm0 = vcmask 523264   ;;  %s909_s11 = sshll.u32 %s1357_s28, 5  ;;  %s907_s14 = sshll.u32 %s1357_s28, 2 }
  0x69   : > { %1266 = vsyncadd (%p1643_p11), [#allocation6], 4294965760  ;;  %979 = vmatprep.subr.bf16.mxu0 %v1105_v0  ;;  %v352_v3 = vld [vmem:[%s298_s19] sm:$0xff]   ;;  %v1112_v5 = vld [vmem:[%s1624_s3 + $0x8] sm:$0xff]   ;;  %s364_s10 = sshra.s32 %s909_s11, 3  ;;  %v1292_v46 = vmov 0  }
  0x6a   : > { %980 = vmatpush3.bf16.msra.mxu0 %v1105_v0  ;;  %v1111_v4 = vld [vmem:[%s1624_s3] sm:$0xff]   ;;  %987 = vmatprep.mubr.msk.bf16.mxu0 %vm410_vm0, %v352_v3  ;;  %v1108_v6 = vld [vmem:[#allocation5 + $0x18] sm:$0xff]   ;;  %v1113_v8 = vld [vmem:[%s1624_s3 + $0x10] sm:$0xff]   ;;  %v466_v15 = vunpack.c.l.bf16 %v352_v3  ;;  %v467_v17 = vunpack.c.h.bf16 %v352_v3  ;;  %s910_s13 = sshll.u32 %s364_s10, 2  ;;  %p344_p8 = scmp.lt.s32.totalorder %s907_s14, 7 }
  0x6b   : > { %981 = vmatprep.subr.bf16.mxu0 %v1106_v1  ;;  %991 = vmatprep.subr.bf16.mxu1 %v1111_v4  ;;  %v354_v7 = vld [vmem:[%s298_s19 + $0x8] sm:$0xff]   ;;  %v1115_v10 = vld [vmem:[%s1624_s3 + $0x20] sm:$0xff]   ;;  %v1117_v12 = vld [vmem:[%s1624_s3 + $0x30] sm:$0xff]   ;;  %s367_s15 = scalar_lea.vmem [#allocation5], %s910_s13  ;;  %s906_s29 = sshll.u32 %s1517_s20, 5 }
  0x6c   : > { %992 = vmatpush3.bf16.msra.mxu1 %v1111_v4  ;;  %v1114_v9 = vld [vmem:[%s1624_s3 + $0x18] sm:$0xff]   ;;  %v1116_v11 = vld [vmem:[%s1624_s3 + $0x28] sm:$0xff]   ;;  %v468_v14 = vunpack.c.l.bf16 %v354_v7  ;;  %v469_v16 = vunpack.c.h.bf16 %v354_v7  ;;  %v1119_v18 = vld [vmem:[#allocation7] sm:$0xff]   ;;  %v470_v21 = vsel %vm410_vm0, %v466_v15, 0.0  ;;  %v473_v23 = vsel %vm410_vm0, %v467_v17, 0.0  ;;  %1104 = vset.pattern.permute.xlu1 %v1292_v46  ;;  %s1652_s14 = smov (!%p344_p8, %s907_s14), 7 }
  0x6d   : > { %993 = vmatprep.subr.bf16.mxu1 %v1112_v5  ;;  %v1118_v13 = vld [vmem:[%s1624_s3 + $0x38] sm:$0xff]   ;;  %v1120_v19 = vld [vmem:[#allocation7 + $0x8] sm:$0xff]   ;;  %471 = vadd.xlane.f32.xlu0 %v470_v21  ;;  %v1121_v24 = vld [vmem:[#allocation7 + $0x10] sm:$0xff]   ;;  %s908_s21 = sshll.u32 %s1652_s14, 3  ;;  %s341_s10 = scalar_lea.vmem [#allocation8], %s906_s29 }
  0x6e   : > { %982 = vmatpush3.bf16.msra.mxu0 %v1106_v1  ;;  %v476_v20 = vsel %vm410_vm0, %v468_v14, 0.0  ;;  %v479_v22 = vsel %vm410_vm0, %v469_v16, 0.0  ;;  %v1122_v25 = vld [vmem:[#allocation7 + $0x18] sm:$0xff]   ;;  %v1123_v26 = vld [vmem:[#allocation7 + $0x20] sm:$0xff]   ;;  %v1124_v27 = vld [vmem:[#allocation7 + $0x28] sm:$0xff]   ;;  %1103 = vset.pattern.permute.xlu0 %v1292_v46  ;;  %s347_s18 = scalar_lea.vmem %s1622_s1, %s908_s21  ;;  %s788_s13 = sshll.u32 %s341_s10, 4  ;;  %s1572_s13 = int_to_ptr.vmem [resolvable:$true] %s788_s13 }
  0x6f   : > { %983 = vmatprep.subr.bf16.mxu0 %v1107_v2  ;;  %477 = vadd.xlane.f32.xlu1 %v476_v20  ;;  %v952_v28 = vld [vmem:[%s367_s15 + $0x8] sm:$0xff]   ;;  %v945_v29 = vld [vmem:[%s367_s15] sm:$0xff]   ;;  %v1125_v44 = vld [vmem:[#allocation7 + $0x30] sm:$0xff]   ;;  %s943_s15 = sshll.u32 %s1357_s28, 9  ;;  %s775_s28 = scalar_lea.sflag [#allocation4], %s1517_s20 }
  0x70   : > { %994 = vmatpush3.bf16.msra.mxu1 %v1112_v5  ;;  %v950_v30 = vunpack.c.l.bf16 %v952_v28  ;;  %v951_v31 = vunpack.c.h.bf16 %v952_v28  ;;  %v946_v33 = vunpack.c.l.bf16 %v945_v29  ;;  %v947_v34 = vunpack.c.h.bf16 %v945_v29  ;;  %v1126_v45 = vld [vmem:[#allocation7 + $0x38] sm:$0xff]   ;;  %v617_v47 = vld [vmem:[%s347_s18 + $0x8] sm:$0xff]  ;;  %v616_v48 = vld [vmem:[%s347_s18] sm:$0xff]  ;;  %s1577_s23 = scalar_lea.hbm %s1628_s7, %s943_s15  ;;  %s1215_s22 = scalar_lea.vmem %s1572_s13, 512 }
  0x71   : > { %995 = vmatprep.subr.bf16.mxu1 %v1113_v8  ;;  %474 = vadd.xlane.f32.xlu0 %v473_v23  ;;  %v618_v49 = vld [vmem:[%s347_s18 + $0x10] sm:$0xff]  ;;  %v619_v50 = vld [vmem:[%s347_s18 + $0x18] sm:$0xff]  ;;  %v919_v56 = vld [vmem:[%s1625_s4] ss:$0 sm:$0xff]  ;;  %p1216_p0 = scmp.ne.s32.totalorder %s1572_s13, %s1215_s22  ;;  %p1644_p2 = scmp.ne.s32.totalorder %s1638_s16, 0 }
  0x72   : > { %984 = vmatpush3.bf16.msra.mxu0 %v1107_v2  ;;  %s1293_s18 = smov [#allocation8]  }
  0x73   : > { %985 = vmatprep.subr.bf16.mxu0 %v1108_v6  ;;  %480 = vadd.xlane.f32.xlu1 %v479_v22  ;;  %p1217_p3 = pnand %p1216_p0, %p1644_p2  ;;  %s1219_s19 = sshll.u32 %s1293_s18, 4  ;;  %s1220_s19 = int_to_ptr.vmem [resolvable:$false] %s1219_s19 }
  0x74   : > { %996 = vmatpush3.bf16.msra.mxu1 %v1113_v8  ;;  %s1221_s9 = scalar_lea.vmem %s1220_s19, 1024  ;;  %p1222_p9 = scmp.lt.s32.totalorder %s1572_s13, %s1220_s19 }
  0x75   : > { %997 = vmatprep.subr.bf16.mxu1 %v1114_v9  ;;  %p1218_p7 = pneg %p1217_p3  ;;  %p1223_p12 = scmp.lt.s32.totalorder %s1221_s9, %s1215_s22 }
  0x76   : > { %986 = vmatpush3.bf16.msra.mxu0 %v1108_v6 }
  0x77   : > { %1011 = vmatprep.subr.bf16.mxu0 %v1119_v18  ;;  %p1224_p1 = por %p1223_p12, %p1222_p9 }
  0x78   : > { %998 = vmatpush3.bf16.msra.mxu1 %v1114_v9 }
  0x79   : > { %988 = vmatmul.mubr.msk.bf16.vlgmr.msra.gmra.mrb[0].mxu0 %vm410_vm0, %v354_v7  ;;  %999 = vmatprep.subr.bf16.mxu1 %v1115_v10  ;;  %p1225_p13 = pnand %p1224_p1, %p1218_p7 }
  0x7a   : > { %1012 = vmatpush3.bf16.msra.mxu0 %v1119_v18  ;;  %v936_v18 = vld [vmem:[%s1627_s6] ss:$0 sm:$0xff] }
  0x7b   : > { %1013 = vmatprep.subr.bf16.mxu0 %v1120_v19 }
  0x7c   : > { %1000 = vmatpush3.bf16.msra.mxu1 %v1115_v10 }
  0x7d   : > { %1001 = vmatprep.subr.bf16.mxu1 %v1116_v11 }
  0x7e   : > { %1014 = vmatpush3.bf16.msra.mxu0 %v1120_v19 }
  0x7f   : > { %1015 = vmatprep.subr.bf16.mxu0 %v1121_v24 }
  0x80   : > { %1002 = vmatpush3.bf16.msra.mxu1 %v1116_v11 }
  0x81   : > { %1003 = vmatprep.subr.bf16.mxu1 %v1117_v12 }
  0x82   : > { %1016 = vmatpush3.bf16.msra.mxu0 %v1121_v24 }
  0x83   : > { %1017 = vmatprep.subr.bf16.mxu0 %v1122_v25 }
  0x84   : > { %1004 = vmatpush3.bf16.msra.mxu1 %v1117_v12  ;;  %742 = vperm.xlu1 %1104, %v617_v47  }
  0x85   : > { %1005 = vmatprep.subr.bf16.mxu1 %v1118_v13 }
  0x86   : > { %1018 = vmatpush3.bf16.msra.mxu0 %v1122_v25 }
  0x87   : > { %1019 = vmatprep.subr.bf16.mxu0 %v1123_v26  ;;  %737 = vperm.xlu0 %1103, %v616_v48  }
  0x88   : > { %1006 = vmatpush3.bf16.msra.mxu1 %v1118_v13  ;;  %747 = vperm.xlu1 %1104, %v618_v49  }
  0x8a   : > { %1020 = vmatpush3.bf16.msra.mxu0 %v1123_v26 }
  0x8b   : > { %1021 = vmatprep.subr.bf16.mxu0 %v1124_v27 }
  0x8c   : > { %752 = vperm.xlu1 %1104, %v619_v50  }
  0x8e   : > { %1022 = vmatpush3.bf16.msra.mxu0 %v1124_v27 }
  0x8f   : > { %1023 = vmatprep.subr.bf16.mxu0 %v1125_v44 }
  0x92   : > { %1024 = vmatpush3.bf16.msra.mxu0 %v1125_v44 }
  0x93   : > { %1025 = vmatprep.subr.bf16.mxu0 %v1126_v45 }
  0x96   : > { %1026 = vmatpush3.bf16.msra.mxu0 %v1126_v45 }
  0xfa   : > { %v472_v52 = vpop.xlane.xlu0 %471 }
  0xfb   : > { %v482_v58 = vadd.f32 1.0, %v472_v52 }
  0xfc   : > { %v478_v51 = vpop.xlane.xlu1 %477 }
  0xfd   : > { %v484_v54 = vadd.f32 1.0, %v478_v51  ;;  %v511_v63 = vmul.f32 %v919_v56, %v482_v58 }
  0xfe   : > { %v475_v55 = vpop.xlane.xlu0 %474 }
  0xff   : > { %v483_v59 = vadd.f32 1.0, %v475_v55  ;;  %v513_v60 = vmul.f32 %v919_v56, %v484_v54 }
 0x100   : > { %v481_v53 = vpop.xlane.xlu1 %480 }
 0x101   : > { %v485_v57 = vadd.f32 1.0, %v481_v53  ;;  %v512_v0 = vmul.f32 %v919_v56, %v483_v59 }
 0x103   : > { %v514_v61 = vmul.f32 %v919_v56, %v485_v57 }
 0x104   : > { %v743_v14 = vpop.permute.xlu1 %742 }
 0x106   : > { %v738_v16 = vpop.permute.xlu0 %737 }
 0x108   : > { %v748_v15 = vpop.permute.xlu1 %747 }
 0x10c   : > { %v753_v21 = vpop.permute.xlu1 %752 }
 0x14c   : > { %v989_v32 = vpop.f32.mrb[0].mxu0 }
 0x14d   : > { %v451_v35 = vpop.f32.mrb[1].mxu0  ;;  %v460_v37 = vadd.f32 %v989_v32, %v950_v30 }
 0x14e   : > { %v990_v36 = vpop.f32.mrb[2].mxu0  ;;  %v452_v40 = vadd.f32 %v946_v33, %v451_v35 }
 0x14f   : > { %v463_v38 = vadd.f32 %v990_v36, %v951_v31  ;;  %v454_v39 = vpop.f32.mrb[3].mxu0 }
 0x150   : > { %v455_v41 = vadd.f32 %v947_v34, %v454_v39 }
 0x151   : > { %v487_v42 = vpack.c.bf16 %v463_v38, %v460_v37 }
 0x152   : > { %v486_v43 = vpack.c.bf16 %v455_v41, %v452_v40 }
 0x154   : > { %1007 = vmatprep.mubr.bf16.mxu1 %v486_v43 }
 0x155   : > { %1008 = vmatmul.mubr.bf16.vlgmr.msra.gmra.mrb[0].mxu1 %v487_v42 }
 0x228   : > { %v1009_v62 = vpop.f32.mrb[0].mxu1 }
 0x229   : > { %v606_v1 = vadd.f32 %v1009_v62, %v513_v60  ;;  %v597_v2 = vpop.f32.mrb[1].mxu1 }
 0x22a   : > { %v598_v3 = vadd.f32 %v597_v2, %v511_v63  ;;  %v1010_v4 = vpop.f32.mrb[2].mxu1 }
 0x22b   : > { %v609_v5 = vadd.f32 %v1010_v4, %v514_v61  ;;  %v600_v6 = vpop.f32.mrb[3].mxu1  ;;  %v614_v8 = vmax.f32 %v606_v1, 0.0 }
 0x22c   : > { %v601_v7 = vadd.f32 %v600_v6, %v512_v0  ;;  %v612_v10 = vmax.f32 %v598_v3, 0.0 }
 0x22d   : > { %v615_v9 = vmax.f32 %v609_v5, 0.0 }
 0x22e   : > { %v613_v11 = vmax.f32 %v601_v7, 0.0 }
 0x22f   : > { %v621_v12 = vpack.c.bf16 %v615_v9, %v614_v8 }
 0x230   : > { %v620_v13 = vpack.c.bf16 %v613_v11, %v612_v10 }
 0x232   : > { %1027 = vmatprep.mubr.bf16.mxu0 %v620_v13 }
 0x233   : > { %1028 = vmatmul.mubr.bf16.vlgmr.msra.gmra.mrb[4].mxu0 %v621_v12 }
 0x306   : > { %v1029_v17 = vpop.f32.mrb[4].mxu0 }
 0x307   : > { %v757_v19 = vmul.f32 %v1029_v17, %v748_v15  ;;  %v720_v20 = vpop.f32.mrb[5].mxu0 }
 0x308   : > { %v755_v22 = vmul.f32 %v738_v16, %v720_v20  ;;  %v1030_v23 = vpop.f32.mrb[6].mxu0 }
 0x309   : > { %v768_v24 = vadd.f32 %v936_v18, %v757_v19  ;;  %v758_v25 = vmul.f32 %v1030_v23, %v753_v21  ;;  %v723_v26 = vpop.f32.mrb[7].mxu0 }
 0x30a   : > { %v766_v27 = vadd.f32 %v936_v18, %v755_v22  ;;  %v756_v28 = vmul.f32 %v743_v14, %v723_v26 }
 0x30b   : > { %772 = vst [vmem:[%s341_s10 + $0x10] sm:$0xff] %v768_v24  ;;  %v769_v29 = vadd.f32 %v936_v18, %v758_v25 }
 0x30c   : > { %770 = vst [vmem:[%s341_s10] sm:$0xff] %v766_v27  ;;  %v767_v30 = vadd.f32 %v936_v18, %v756_v28 }
 0x30d   : > { %773 = vst [vmem:[%s341_s10 + $0x18] sm:$0xff] %v769_v29 }
 0x30e   : > { %771 = vst [vmem:[%s341_s10 + $0x8] sm:$0xff] %v767_v30 }
 0x30f   : > { %1228 = shalt.err (!%p1225_p13)
}
 0x310   : > { %s1229_s29 = scalar_lea.hbm %s1577_s23, 512  ;;  %s1233_s10 = scalar_lea.hbm %s1628_s7, 1024 }
 0x311   : > { %p1230_p6 = scmp.ne.s32.totalorder %s1577_s23, %s1229_s29  ;;  %p1234_p5 = scmp.lt.u32.totalorder %s1577_s23, %s1628_s7 }
 0x312   : > { %p1235_p11 = scmp.lt.u32.totalorder %s1233_s10, %s1229_s29  ;;  %p1237_p0 = scmp.lt.u32.totalorder %s1229_s29, %s1577_s23 }
 0x313   : > { %p1231_p10 = pnand %p1230_p6, %p1644_p2 }
 0x314   : > { %p1236_p8 = por %p1235_p11, %p1234_p5 }
 0x315   : > { %p1232_p4 = pneg %p1231_p10 }
 0x316   : > { %p1238_p3 = por %p1237_p0, %p1236_p8 }
 0x318   : > { %p1239_p7 = pnand %p1238_p3, %p1232_p4 }
 0x31a   : > { %1242 = shalt.err (!%p1239_p7)
}
 0x31b   : > { %s1294_s21 = smov 128   ;;  %s1295_s22 = smov 8  }
 0x31c   : > { %1041 = dma.vmem_to_hbm [thread:$0]  (%p1644_p2), %s1572_s13, 512, %s1577_s23, %s775_s28, %s1294_s21, %s1294_s21, %s1295_s22  }
 0x31d PF: > { %s803_s18 = sand.u32 1, %s1273_s24   ;;  %p1645_p9 = scmp.ne.s32.totalorder %s1634_s8, 0 }
 0x31e   : > { %p1646_p12 = scmp.ge.s32.totalorder %s1285_s27, 2  ;;  %s804_s19 = scalar_lea.sflag [#allocation4], %s803_s18 }
 0x320   : > { %p1055_p1 = pnand %p1646_p12, %p1645_p9 }
 0x322   : > { %1268 = dma.done.wait (!%p1055_p1), %s804_s19, 512  }
 0x323   : > { %1270 = vsyncadd (!%p1055_p1), %s804_s19, 4294966784  ;;  %p21_p13 = scmp.ge.s32.totalorder %s1452_s12, 4   ;;  %s1647_s24 = smov %s1277_s25 }
 0x324   : > { %s1648_s25 = smov %s1281_s26  ;;  %s1649_s26 = smov %s1468_s17 }
 0x325   : > { %s1650_s27 = smov %s1452_s12  ;;  %23 = sbr.rel (!%p21_p13) target bundleno = 6 (0x6), region = 105 }
 0x32c   :  { %809 = vsyncpa [#allocation3], 1 }
 0x32d   :  { %811 = vsyncpa [#allocation3 + $0x1], 1 }
 0x32e   :  { %812 = vsyncpa [#allocation6], 1 }
 0x32f   :  { %813 = vsyncpa [#allocation4], 1 }
 0x330   :  { %815 = vsyncpa [#allocation4 + $0x1], 1 }

</bundles_post_ra>
